<compile_context>
chip_gen: v6e
topology: v6e:2x2x1
jax: 0.10.0
libtpu: 0.0.40
codegen_flags: <defaults>
</compile_context>

<pallas_src>
import functools

import jax
import jax.numpy as jnp
from jax.experimental import pallas as pl
from jax.experimental.pallas import tpu as pltpu


def _se_fused_kernel(x_ref, w1t_ref, b1_ref, w2_ref, b2_ref, o_ref, *, nb, c):
    """Fused SE for a block of `nb` whole samples, laid out as (nb*c, HW) rows.

    x_ref / o_ref : (nb*c, HW) block of the input / output feature map.
    w1t_ref       : (c, cr)  = fc1.weight.T
    b1_ref        : (1, cr)  = fc1.bias
    w2_ref        : (c, cr)  = fc2.weight (PyTorch layout, used as-is)
    b2_ref        : (c, 1)   = fc2.bias
    """
    x = x_ref[...]                                  # (nb*c, HW), input dtype
    hw = x.shape[-1]                                # static trace-time int

    # ---- Squeeze: per-(sample, channel) mean over the spatial (lane) axis.
    # Accumulate in f32; the cast feeds the reduction only (the big rescale
    # below stays in the input dtype).
    pooled = jnp.sum(x.astype(jnp.float32), axis=-1, keepdims=True) * (1.0 / hw)

    # ---- Excitation: tiny FC1 -> ReLU -> FC2 -> sigmoid, in f32 ----
    w1t = w1t_ref[...].astype(jnp.float32)          # (c, cr)
    b1 = b1_ref[...].astype(jnp.float32)            # (1, cr)
    w2 = w2_ref[...].astype(jnp.float32)            # (c, cr)
    b2 = b2_ref[...].astype(jnp.float32)            # (c, 1)

    gates = []
    for i in range(nb):                             # nb is small; unrolled at trace time
        p_i = pooled[i * c:(i + 1) * c, :]          # (c, 1)  static slice
        # FC1: h[0, r] = sum_c fc1.weight[r, c] * pooled[c] + fc1.bias[r]
        h = jnp.sum(w1t * p_i, axis=0, keepdims=True) + b1      # (1, cr)
        h = jnp.maximum(h, 0.0)                                  # ReLU
        # FC2: z[c, 0] = sum_r fc2.weight[c, r] * h[r] + fc2.bias[c]
        z = jnp.sum(w2 * h, axis=-1, keepdims=True) + b2         # (c, 1)
        # sigmoid; pl.reciprocal(approx=True) would push the divide onto the
        # EUP, but the exact form keeps tight numerics on the tiny gate.
        gates.append(pl.reciprocal(1.0 + jnp.exp(-z), approx=False))
    gate = gates[0] if nb == 1 else jnp.concatenate(gates, axis=0)   # (nb*c, 1) f32

    # ---- Scale: broadcast the per-row gate over the lanes.  Done in the
    # input dtype (bf16-native on v6e/v7x; plain f32 for f32 inputs).
    o_ref[...] = x * gate.astype(x.dtype)


def _samples_per_block(n, c, hw, itemsize,
                       target_block_bytes=1 << 20, min_grid_steps=4):
    """Pick Nb = samples per grid step.

    Preferences, in order:
      * Nb divides N (clean grid).
      * Nb*C is a multiple of the sublane packing (8 for 4-byte, 16 for
        2-byte dtypes) OR covers the full N*C extent, so block rows are
        fully packed and stores are unmasked.
      * Block stays around ~1 MiB (measured sweet spot: large enough to
        amortise the ~0.35 us per-step overhead and hit the HBM roofline,
        small enough that double-buffering never stresses VMEM).
      * Keep >= min_grid_steps grid steps when possible so the automatic
        pipeline has blocks to prefetch / write back.
    """
    itemsize = int(itemsize)
    pack = max(32 // itemsize, 1)
    sample_bytes = c * hw * itemsize
    divisors = [d for d in range(1, n + 1) if n % d == 0]
    cands = [d for d in divisors if (d * c) % pack == 0 or d == n] or [n]
    floor_steps = min(min_grid_steps, n // cands[0])
    best = cands[0]
    for d in cands:
        if d > cands[0] and d * sample_bytes > target_block_bytes:
            break
        if (n // d) < floor_steps:
            break
        best = d
    return best


def channel_se_layer(x, w1, b1, w2, b2):
    """Pallas ChannelSELayer.forward.

    x  : (N, C, H, W)
    w1 : (Cr, C)   fc1.weight   (PyTorch Linear layout: (out, in))
    b1 : (Cr,)     fc1.bias
    w2 : (C, Cr)   fc2.weight
    b2 : (C,)      fc2.bias
    Returns (N, C, H, W), same dtype as x.
    """
    N, C, H, W = x.shape
    Cr = w1.shape[0]
    HW = H * W
    M = N * C
    itemsize = jnp.dtype(x.dtype).itemsize

    # Free, contiguous reshape in the wrapper: one (sample, channel) row per
    # sublane-dim entry, spatial axis lane-dense.
    x2 = x.reshape(M, HW)
    w1t = jnp.transpose(w1)          # (C, Cr)
    b1r = b1.reshape(1, Cr)
    b2c = b2.reshape(C, 1)

    nb = _samples_per_block(N, C, HW, itemsize)
    rows = nb * C
    grid = (N // nb,)

    # Explicit scoped-VMEM budget: in + out blocks, double-buffered, plus
    # headroom for the (tiny, tile-padded) weights and in-kernel temporaries.
    block_bytes = rows * HW * itemsize
    need = 4 * block_bytes + (4 << 20)
    vmem_limit = int(min(max(need, 16 << 20), 32 << 20))

    kernel = functools.partial(_se_fused_kernel, nb=nb, c=C)

    out = pl.pallas_call(
        kernel,
        out_shape=jax.ShapeDtypeStruct((M, HW), x.dtype),
        grid_spec=pltpu.PrefetchScalarGridSpec(
            num_scalar_prefetch=0,
            grid=grid,
            in_specs=[
                # Nb whole samples per grid step, sublane- and lane-dense.
                pl.BlockSpec((rows, HW), lambda n: (n, 0)),
                # Tiny weights/biases: full-extent blocks, same every step.
                pl.BlockSpec((C, Cr), lambda n: (0, 0)),
                pl.BlockSpec((1, Cr), lambda n: (0, 0)),
                pl.BlockSpec((C, Cr), lambda n: (0, 0)),
                pl.BlockSpec((C, 1), lambda n: (0, 0)),
            ],
            out_specs=pl.BlockSpec((rows, HW), lambda n: (n, 0)),
        ),
        compiler_params=pltpu.CompilerParams(
            # Row-blocks are independent -> megacore / 2-TC sharding on v7x.
            dimension_semantics=("parallel",),
            vmem_limit_bytes=vmem_limit,
        ),
    )(x2, w1t, b1r, w2, b2c)

    return out.reshape(N, C, H, W)


if __name__ == "__main__":
    root = jax.random.PRNGKey(0)

    cases = [
        # (N, C, H, W), reduction_ratio, dtype, tolerance
        ((2, 4, 16, 16), 2, jnp.float32, 1e-5),    # spec-sized; Nb*C = full extent
        ((16, 8, 16, 16), 2, jnp.float32, 1e-5),   # exercises Nb=4 batched blocks
        ((16, 8, 16, 16), 2, jnp.bfloat16, 2e-2),  # bf16-native rescale path
    ]

    for idx, ((N, C, H, W), rr, dtype, tol) in enumerate(cases):
        kx, k1, kb1, k2, kb2 = jax.random.split(jax.random.fold_in(root, idx), 5)
        Cr = C // rr

        x = jax.random.normal(kx, (N, C, H, W), dtype=jnp.float32).astype(dtype)
        w1 = jax.random.normal(k1, (Cr, C), dtype=jnp.float32) * (1.0 / jnp.sqrt(C))
        b1 = jax.random.normal(kb1, (Cr,), dtype=jnp.float32) * 0.1
        w2 = jax.random.normal(k2, (C, Cr), dtype=jnp.float32) * (1.0 / jnp.sqrt(Cr))
        b2 = jax.random.normal(kb2, (C,), dtype=jnp.float32) * 0.1

        y = channel_se_layer(x, w1, b1, w2, b2)
        jax.block_until_ready(y)

        # Pure-JAX reference matching the PyTorch forward (gate computed in
        # f32, rescale applied in the input dtype — same as the kernel).
        sq = x.astype(jnp.float32).reshape(N, C, -1).mean(axis=2)     # (N, C)
        h_ref = jax.nn.relu(sq @ w1.T + b1)                           # (N, Cr)
        gate_ref = jax.nn.sigmoid(h_ref @ w2.T + b2)                  # (N, C)
        y_ref = x * gate_ref.astype(dtype)[:, :, None, None]

        assert y.shape == x.shape, (idx, y.shape, x.shape)
        assert y.dtype == x.dtype, (idx, y.dtype, x.dtype)
        y32 = y.astype(jnp.float32)
        y_ref32 = y_ref.astype(jnp.float32)
        max_err = float(jnp.max(jnp.abs(y32 - y_ref32)))
        assert jnp.allclose(y32, y_ref32, atol=tol, rtol=tol), (idx, max_err)

    print("KERNEL_OK")
</pallas_src>

<mosaic_0001>
module attributes {stable_mosaic.version = 11 : i64} {
  func.func @_se_fused_kernel(%arg0: i32, %arg1: memref<8x256xf32, #tpu.memory_space<vmem>>, %arg2: memref<4x2xf32, #tpu.memory_space<vmem>>, %arg3: memref<1x2xf32, #tpu.memory_space<vmem>>, %arg4: memref<4x2xf32, #tpu.memory_space<vmem>>, %arg5: memref<4x1xf32, #tpu.memory_space<vmem>>, %arg6: memref<8x256xf32, #tpu.memory_space<vmem>>) attributes {dimension_semantics = [#tpu.dimension_semantics<parallel>], iteration_bounds = array<i64: 1>, scalar_prefetch = 0 : i64, scratch_operands = 0 : i64, tpu.core_type = #tpu.core_type<tc>, window_params = [{transform_indices = @transform_0, window_bounds = array<i64: 8, 256>}, {pipeline_mode = #tpu.pipeline_mode<synchronous>, transform_indices = @transform_1, window_bounds = array<i64: 4, 2>}, {pipeline_mode = #tpu.pipeline_mode<synchronous>, transform_indices = @transform_2, window_bounds = array<i64: 1, 2>}, {pipeline_mode = #tpu.pipeline_mode<synchronous>, transform_indices = @transform_3, window_bounds = array<i64: 4, 2>}, {pipeline_mode = #tpu.pipeline_mode<synchronous>, transform_indices = @transform_4, window_bounds = array<i64: 4, 1>}, {transform_indices = @transform_5, window_bounds = array<i64: 8, 256>}]} {
    %c0 = arith.constant 0 : index
    %c0_0 = arith.constant 0 : index
    %0 = vector.load %arg1[%c0, %c0_0] : memref<8x256xf32, #tpu.memory_space<vmem>>, vector<8x256xf32>
    %cst = arith.constant dense<0.000000e+00> : vector<8xf32>
    %1 = vector.multi_reduction <add>, %0, %cst [1] : vector<8x256xf32> to vector<8xf32>
    %2 = vector.shape_cast %1 : vector<8xf32> to vector<8x1xf32>
    %cst_1 = arith.constant 3.906250e-03 : f32
    %3 = vector.broadcast %cst_1 : f32 to vector<8x1xf32>
    %4 = arith.mulf %2, %3 : vector<8x1xf32>
    %c0_2 = arith.constant 0 : index
    %c0_3 = arith.constant 0 : index
    %5 = vector.load %arg2[%c0_2, %c0_3] : memref<4x2xf32, #tpu.memory_space<vmem>>, vector<4x2xf32>
    %c0_4 = arith.constant 0 : index
    %c0_5 = arith.constant 0 : index
    %6 = vector.load %arg3[%c0_4, %c0_5] : memref<1x2xf32, #tpu.memory_space<vmem>>, vector<1x2xf32>
    %c0_6 = arith.constant 0 : index
    %c0_7 = arith.constant 0 : index
    %7 = vector.load %arg4[%c0_6, %c0_7] : memref<4x2xf32, #tpu.memory_space<vmem>>, vector<4x2xf32>
    %c0_8 = arith.constant 0 : index
    %c0_9 = arith.constant 0 : index
    %8 = vector.load %arg5[%c0_8, %c0_9] : memref<4x1xf32, #tpu.memory_space<vmem>>, vector<4x1xf32>
    %9 = vector.extract_strided_slice %4 {offsets = [0, 0], sizes = [4, 1], strides = [1, 1]} : vector<8x1xf32> to vector<4x1xf32>
    %10 = vector.broadcast %9 : vector<4x1xf32> to vector<4x2xf32>
    %11 = arith.mulf %5, %10 : vector<4x2xf32>
    %cst_10 = arith.constant dense<0.000000e+00> : vector<2xf32>
    %12 = vector.multi_reduction <add>, %11, %cst_10 [0] : vector<4x2xf32> to vector<2xf32>
    %13 = vector.shape_cast %12 : vector<2xf32> to vector<1x2xf32>
    %14 = arith.addf %13, %6 : vector<1x2xf32>
    %cst_11 = arith.constant 0.000000e+00 : f32
    %15 = vector.broadcast %cst_11 : f32 to vector<1x2xf32>
    %16 = arith.maximumf %14, %15 : vector<1x2xf32>
    %17 = vector.broadcast %16 : vector<1x2xf32> to vector<4x2xf32>
    %18 = arith.mulf %7, %17 : vector<4x2xf32>
    %cst_12 = arith.constant dense<0.000000e+00> : vector<4xf32>
    %19 = vector.multi_reduction <add>, %18, %cst_12 [1] : vector<4x2xf32> to vector<4xf32>
    %20 = vector.shape_cast %19 : vector<4xf32> to vector<4x1xf32>
    %21 = arith.addf %20, %8 : vector<4x1xf32>
    %cst_13 = arith.constant 0.000000e+00 : f32
    %22 = vector.broadcast %cst_13 : f32 to vector<4x1xf32>
    %23 = arith.subf %22, %21 : vector<4x1xf32>
    %24 = math.exp %23 : vector<4x1xf32>
    %cst_14 = arith.constant 1.000000e+00 : f32
    %25 = vector.broadcast %cst_14 : f32 to vector<4x1xf32>
    %26 = arith.addf %25, %24 : vector<4x1xf32>
    %27 = tpu.reciprocal %26 : vector<4x1xf32> -> vector<4x1xf32>
    %28 = vector.extract_strided_slice %4 {offsets = [4, 0], sizes = [4, 1], strides = [1, 1]} : vector<8x1xf32> to vector<4x1xf32>
    %29 = vector.broadcast %28 : vector<4x1xf32> to vector<4x2xf32>
    %30 = arith.mulf %5, %29 : vector<4x2xf32>
    %cst_15 = arith.constant dense<0.000000e+00> : vector<2xf32>
    %31 = vector.multi_reduction <add>, %30, %cst_15 [0] : vector<4x2xf32> to vector<2xf32>
    %32 = vector.shape_cast %31 : vector<2xf32> to vector<1x2xf32>
    %33 = arith.addf %32, %6 : vector<1x2xf32>
    %cst_16 = arith.constant 0.000000e+00 : f32
    %34 = vector.broadcast %cst_16 : f32 to vector<1x2xf32>
    %35 = arith.maximumf %33, %34 : vector<1x2xf32>
    %36 = vector.broadcast %35 : vector<1x2xf32> to vector<4x2xf32>
    %37 = arith.mulf %7, %36 : vector<4x2xf32>
    %cst_17 = arith.constant dense<0.000000e+00> : vector<4xf32>
    %38 = vector.multi_reduction <add>, %37, %cst_17 [1] : vector<4x2xf32> to vector<4xf32>
    %39 = vector.shape_cast %38 : vector<4xf32> to vector<4x1xf32>
    %40 = arith.addf %39, %8 : vector<4x1xf32>
    %cst_18 = arith.constant 0.000000e+00 : f32
    %41 = vector.broadcast %cst_18 : f32 to vector<4x1xf32>
    %42 = arith.subf %41, %40 : vector<4x1xf32>
    %43 = math.exp %42 : vector<4x1xf32>
    %cst_19 = arith.constant 1.000000e+00 : f32
    %44 = vector.broadcast %cst_19 : f32 to vector<4x1xf32>
    %45 = arith.addf %44, %43 : vector<4x1xf32>
    %46 = tpu.reciprocal %45 : vector<4x1xf32> -> vector<4x1xf32>
    %47 = tpu.concatenate %27, %46 in 0 : vector<4x1xf32>, vector<4x1xf32> -> vector<8x1xf32>
    %48 = vector.broadcast %47 : vector<8x1xf32> to vector<8x256xf32>
    %49 = arith.mulf %0, %48 : vector<8x256xf32>
    %c0_20 = arith.constant 0 : index
    %c0_21 = arith.constant 0 : index
    %50 = vector.load %arg6[%c0_20, %c0_21] : memref<8x256xf32, #tpu.memory_space<vmem>>, vector<8x256xf32>
    tpu.vector_store %arg6[%c0_20, %c0_21], %49 {strides = array<i32>} : memref<8x256xf32, #tpu.memory_space<vmem>>, vector<8x256xf32>,
    return
  }
  func.func @transform_0(%arg0: i32) -> (i32, i32) {
    %c0_i32 = arith.constant 0 : i32
    %c0_i32_0 = arith.constant 0 : i32
    return %arg0, %c0_i32 : i32, i32
  }
  func.func @transform_1(%arg0: i32) -> (i32, i32) {
    %c0_i32 = arith.constant 0 : i32
    %c0_i32_0 = arith.constant 0 : i32
    %c0_i32_1 = arith.constant 0 : i32
    return %c0_i32, %c0_i32_0 : i32, i32
  }
  func.func @transform_2(%arg0: i32) -> (i32, i32) {
    %c0_i32 = arith.constant 0 : i32
    %c0_i32_0 = arith.constant 0 : i32
    %c0_i32_1 = arith.constant 0 : i32
    return %c0_i32, %c0_i32_0 : i32, i32
  }
  func.func @transform_3(%arg0: i32) -> (i32, i32) {
    %c0_i32 = arith.constant 0 : i32
    %c0_i32_0 = arith.constant 0 : i32
    %c0_i32_1 = arith.constant 0 : i32
    return %c0_i32, %c0_i32_0 : i32, i32
  }
  func.func @transform_4(%arg0: i32) -> (i32, i32) {
    %c0_i32 = arith.constant 0 : i32
    %c0_i32_0 = arith.constant 0 : i32
    %c0_i32_1 = arith.constant 0 : i32
    return %c0_i32, %c0_i32_0 : i32, i32
  }
  func.func @transform_5(%arg0: i32) -> (i32, i32) {
    %c0_i32 = arith.constant 0 : i32
    %c0_i32_0 = arith.constant 0 : i32
    return %arg0, %c0_i32 : i32, i32
  }
}

</mosaic_0001>

<bundles_post_ra>
// kernel: tpu_custom_call.1
= control target key start
LH: loop header
LB: loop body
LE: loop exit
PB: predicated region body
PF: predicated region fallthrough
CT: control target
= control target key end

     0   :  { %s210_s0 = inlined_call_operand.vmem [shape: f32[8,256], index: 0, kind: input, shape index: {}]   ;;  %s211_s1 = inlined_call_operand.vmem [shape: f32[4,2], index: 1, kind: input, shape index: {}]   ;;  %s212_s2 = inlined_call_operand.vmem [shape: f32[1,2], index: 2, kind: input, shape index: {}]   ;;  %s213_s3 = inlined_call_operand.vmem [shape: f32[4,2], index: 3, kind: input, shape index: {}]   ;;  %s214_s4 = inlined_call_operand.vmem [shape: f32[4,1], index: 4, kind: input, shape index: {}]   ;;  %s215_s5 = inlined_call_operand.hbm [shape: f32[8,256], index: 5, kind: output, shape index: {}]  }
   0x1   :  { %v180_v0 = vld [vmem:[%s210_s0] sm:$0xff]  ;;  %v185_v1 = vld [vmem:[%s210_s0 + $0x8] sm:$0xff] }
   0x2   :  { %v23_v2 = vadd.f32 %v185_v1, %v180_v0 }
   0x3   :  { %10 = vsyncpa [#allocation3], 0  ;;  %v27_v3 = vld [vmem:[%s211_s1] sm:$0xf]  ;;  %vm32_vm0 = vcmask 11264   ;;  %v42_v15 = vlaneseq  ;;  %v145_v38 = vmov 0  }
   0x4   :  { %24 = vadd.xlane.f32.xlu0 %v23_v2  ;;  %v28_v22 = vld [vmem:[%s212_s2] sm:$0x1]  ;;  %113 = vset.pattern.permute.xlu1 %v145_v38  ;;  %vm86_vm1 = vcmask 1043456  }
   0x5   :  { %v43_v20 = vshrl.u32 %v42_v15, 7  ;;  %v29_v30 = vld [vmem:[%s213_s3] sm:$0xf]  ;;  %114 = vset.pattern.permute.xlu0 %v145_v38  ;;  %s146_s3 = smov [#allocation2]  }
   0x6   :  { %v30_v39 = vld [vmem:[%s214_s4] sm:$0xf]  ;;  %s103_s4 = sshll.u32 %s146_s3, 4  ;;  %s104_s4 = int_to_ptr.vmem [resolvable:$true] %s103_s4 }
   0x7   :  { %v44_v26 = vsub.s32 0, %v43_v20  ;;  %s123_s27 = scalar_lea.vmem %s104_s4, 256  ;;  %p128_p1 = scmp.lt.s32.totalorder %s104_s4, %s104_s4 }
   0x8   :  { %p124_p0 = scmp.ne.s32.totalorder %s104_s4, %s123_s27  ;;  %p129_p2 = scmp.lt.s32.totalorder %s123_s27, %s123_s27 }
   0xa   :  { %p130_p3 = por %p129_p2, %p128_p1 }
   0xc   :  { %p131_p4 = pnand %p130_p3, %p124_p0 }
  0x8d   :  { %v25_v4 = vpop.xlane.xlu0 %24 }
  0x8e   :  { %v26_v5 = vmul.f32 0.00390625, %v25_v4 }
  0x90   :  { %v31_v6 = vmul.f32 %v27_v3, %v26_v5  ;;  %v57_v7 = vrot.slane %v26_v5, 4 }
  0x92   :  { %v59_v8 = vmul.f32 %v57_v7, %v27_v3  ;;  %v33_v9 = vsel %vm32_vm0, %v31_v6, 0.0 }
  0x93   :  { %v34_v10 = vrot.slane %v33_v9, 4 }
  0x94   :  { %v60_v11 = vsel %vm32_vm0, %v59_v8, 0.0 }
  0x95   :  { %v35_v12 = vadd.f32 %v34_v10, %v33_v9  ;;  %v61_v13 = vrot.slane %v60_v11, 4 }
  0x97   :  { %v36_v14 = vrot.slane %v35_v12, 2  ;;  %v62_v16 = vadd.f32 %v61_v13, %v60_v11 }
  0x99   :  { %v37_v17 = vadd.f32 %v36_v14, %v35_v12  ;;  %v63_v18 = vrot.slane %v62_v16, 2 }
  0x9b   :  { %v38_v19 = vrot.slane %v37_v17, 1  ;;  %v64_v21 = vadd.f32 %v63_v18, %v62_v16 }
  0x9d   :  { %v39_v23 = vadd.f32 %v38_v19, %v37_v17  ;;  %v65_v24 = vrot.slane %v64_v21, 1 }
  0x9f   :  { %v40_v25 = vadd.f32 %v39_v23, %v28_v22  ;;  %v66_v27 = vadd.f32 %v65_v24, %v64_v21 }
  0xa1   :  { %v41_v28 = vmax.f32 %v40_v25, 0.0  ;;  %v67_v29 = vadd.f32 %v66_v27, %v28_v22 }
  0xa3   :  { %v45_v31 = vrot.slane %v41_v28, %v44_v26  ;;  %v68_v32 = vmax.f32 %v67_v29, 0.0 }
  0xa5   :  { %v46_v33 = vmul.f32 %v45_v31, %v29_v30  ;;  %v72_v34 = vrot.slane %v68_v32, %v44_v26 }
  0xa7   :  { %v47_v35 = vsel %vm32_vm0, %v46_v33, 0.0  ;;  %v73_v36 = vmul.f32 %v72_v34, %v29_v30 }
  0xa8   :  { %48 = vadd.xlane.f32.xlu1 %v47_v35 }
  0xa9   :  { %v74_v37 = vsel %vm32_vm0, %v73_v36, 0.0 }
  0xaa   :  { %75 = vadd.xlane.f32.xlu0 %v74_v37 }
 0x131   :  { %v49_v40 = vpop.xlane.xlu1 %48 }
 0x132   :  { %v50_v41 = vadd.f32 %v49_v40, %v30_v39 }
 0x133   :  { %v76_v42 = vpop.xlane.xlu0 %75 }
 0x134   :  { %v51_v43 = vsub.f32 0.0, %v50_v41  ;;  %v77_v44 = vadd.f32 %v76_v42, %v30_v39 }
 0x136   :  { %v52_v45 = vmul.f32 1.442695, %v51_v43  ;;  %v78_v46 = vsub.f32 0.0, %v77_v44 }
 0x138   :  { %115 = vpow2.f32 %v52_v45  ;;  %v79_v47 = vmul.f32 1.442695, %v78_v46 }
 0x13a   :  { %117 = vpow2.f32 %v79_v47 }
 0x145   :  { %v116_v48 = vpop.eup %115 }
 0x146   :  { %v54_v50 = vadd.f32 1.0, %v116_v48 }
 0x147   :  { %v118_v49 = vpop.eup %117 }
 0x148   :  { %v81_v51 = vadd.f32 1.0, %v118_v49 }
 0x14a   :  { %119 = vrcp.f32 %v81_v51 }
 0x14b   :  { %121 = vrcp.f32 %v54_v50 }
 0x157   :  { %v120_v52 = vpop.eup %119 }
 0x158   :  { %v84_v53 = vrot.slane %v120_v52, 4  ;;  %v122_v54 = vpop.eup %121 }
 0x15a   :  { %v87_v55 = vsel %vm86_vm1, %v122_v54, %v84_v53 }
 0x15b   :  { %90 = vperm.xlu1 %113, %v87_v55  }
 0x1d6   :  { %v91_v56 = vpop.permute.xlu1 %90 }
 0x1d7   :  { %v93_v57 = vmul.f32 %v91_v56, %v180_v0  ;;  %v94_v58 = vmul.f32 %v91_v56, %v185_v1 }
 0x1d9   :  { %95 = vst [vmem:[#allocation2] sm:$0xff] %v93_v57  ;;  %96 = vst [vmem:[#allocation2 + $0x8] sm:$0xff] %v94_v58 }
 0x1da   :  { %134 = shalt.err (!%p131_p4)
}
 0x1db   :  { %106 = dma.vmem_to_hbm [thread:$0]  %s104_s4, 256, %s215_s5, [#allocation3]  }
 0x1dc   :  { %143 = dma.done.wait [#allocation3], 256  }
 0x1dd   :  { %144 = vsyncadd [#allocation3], 4294967040 }
 0x1de   :  { %110 = vsyncpa [#allocation3], 1 }

</bundles_post_ra>
